<compile_context>
chip_gen: v6e
topology: v6e:2x2x1
jax: 0.10.0
libtpu: 0.0.40
codegen_flags: <defaults>
</compile_context>

<pallas_src>
import functools
import numpy as np
import jax
import jax.numpy as jnp
from jax.experimental import pallas as pl
from jax.experimental.pallas import tpu as pltpu

try:
    from scipy.optimize import linear_sum_assignment as _scipy_lsa
except Exception:  # pragma: no cover
    _scipy_lsa = None


def _round_up(x, m):
    return ((x + m - 1) // m) * m


def _choose_b_block(B):
    # >= 2 grid steps when B >= 2 (v7x has 2 TensorCores); cap B_blk for VMEM
    # (~0.4 MiB per batch element double-buffered -> B_blk=8 is ~3.3 MiB).
    if B <= 1:
        return 1
    return max(1, min(8, (B + 1) // 2))


# ----------------------------------------------------------------------------
# Pallas kernel: pairwise curve distance (+ cyclic vertex id) for a block of
# B_blk batch elements per grid step.
# ----------------------------------------------------------------------------
def _curve_cost_kernel(closed_ref, cyc_ref, predt_ref, predsq_ref, dist_ref, vid_ref):
    # closed_ref : (Bb, Tp, Qp)      int32  is_closed flag, pre-broadcast on lanes
    # cyc_ref    : (Bb, Tp, 2P, Dp)  f32    2P cyclic variants per target (flat+pad)
    # predt_ref  : (Bb, Dp, Qp)      f32    flattened predicted curves, transposed
    # predsq_ref : (Bb, 1, Qp)       f32    precomputed ||pred||^2
    # dist_ref   : (Bb, Tp, Qp)      f32    PARTIAL distance: min over variants of
    #                                        (||pred||^2 - 2*dot)/P  (tgt_sq added
    #                                        + clamped in the wrapper)
    # vid_ref    : (Bb, Tp, Qp)      int32
    bb, tp, two_p, dp = cyc_ref.shape
    qp = predt_ref.shape[2]
    half = two_p // 2  # = P (points per curve)

    cyc = cyc_ref[...].reshape(bb, tp * two_p, dp)      # [Bb, Tp*2P, Dp]
    predt = predt_ref[...]                              # [Bb, Dp, Qp]

    # canonical MXU feed: contract Dp (LHS lane / RHS sublane), N = Qp on lanes.
    # NOTE: default MXU precision; vid ties at ulp level could in theory differ
    # from an fp64 reference — use Precision.HIGHEST if exact ids are required.
    dots = jax.lax.dot_general(
        cyc, predt,
        dimension_numbers=(((2,), (1,)), ((0,), (0,))),
        preferred_element_type=jnp.float32)             # [Bb, Tp*2P, Qp]

    neg = (predsq_ref[...] - 2.0 * dots) * (1.0 / half) # [Bb, Tp*2P, Qp]
    neg4 = neg.reshape(bb, tp, two_p, qp)               # [Bb, Tp, 2P, Qp]

    # closed-curve branch: min over all 2P cyclic variants + remapped argmin id
    d_closed = jnp.min(neg4, axis=2)                    # [Bb, Tp, Qp]
    row_ids = jax.lax.broadcasted_iota(jnp.int32, neg4.shape, 2)
    ids = jnp.min(jnp.where(neg4 <= d_closed[:, :, None, :], row_ids, two_p), axis=2)
    ids = jnp.where(ids > half - 1, (2 * half - 1) - ids, ids)

    # open-curve branch: forward (variant 0) vs reversed (variant P)
    d_open = jnp.minimum(neg4[:, :, 0, :], neg4[:, :, half, :])

    closed = closed_ref[...] > 0
    dist_ref[...] = jnp.where(closed, d_closed, d_open)
    vid_ref[...] = jnp.where(closed, ids, jnp.zeros_like(ids))


# ----------------------------------------------------------------------------
# Batched wrapper (one pallas_call for the whole batch)
# ----------------------------------------------------------------------------
def _pairwise_chamfer_core(pred_points, tgt_points_pad, is_closed_pad):
    """pred_points [B,Q,P,3], tgt_points_pad [B,Tp,P,3] (zero padded targets),
       is_closed_pad [B,Tp] int  ->  dist [B,Tp,Qp] f32, vid [B,Tp,Qp] i32."""
    B, Q, P, _ = pred_points.shape
    Tp = tgt_points_pad.shape[1]
    D = 3 * P
    Dp = _round_up(max(D, 128), 128)
    Qp = _round_up(max(Q, 128), 128)
    two_p = 2 * P
    B_blk = _choose_b_block(B)
    Bp = _round_up(B, B_blk)
    n_steps = Bp // B_blk

    # cyclic variants: forward rolls 0..P-1, then reversed rolls 0..P-1
    # (single gather; matches torch's cyclic_curve_points order)
    jj = jnp.arange(P)[:, None]
    kk = jnp.arange(P)[None, :]
    fwd = (kk - jj) % P                                    # [P, P]
    idx = jnp.concatenate([fwd, (P - 1) - fwd], axis=0)    # [2P, P]
    tgtf = tgt_points_pad.astype(jnp.float32)
    cyc = jnp.take(tgtf, idx, axis=2)                      # [B,Tp,2P,P,3]
    cyc = cyc.reshape(B, Tp, two_p, D)
    cyc = jnp.pad(cyc, ((0, Bp - B), (0, 0), (0, 0), (0, Dp - D)))

    # per-target squared norm (invariant across cyclic variants) — added after
    # the kernel's reduction.
    tgt_sq = jnp.sum(jnp.square(tgtf), axis=(2, 3))        # [B, Tp]

    pred = pred_points.astype(jnp.float32).reshape(B, Q, D)
    pred_sq = jnp.sum(pred * pred, axis=-1)                # [B, Q]
    pred_sq = jnp.pad(pred_sq, ((0, Bp - B), (0, Qp - Q)))[:, None, :]   # [Bp,1,Qp]
    pred_t = jnp.pad(pred, ((0, Bp - B), (0, Qp - Q), (0, Dp - D)))      # [Bp,Qp,Dp]
    pred_t = jnp.transpose(pred_t, (0, 2, 1))              # [Bp, Dp, Qp]

    closed = jnp.broadcast_to(is_closed_pad.astype(jnp.int32)[:, :, None],
                              (B, Tp, Qp))
    closed = jnp.pad(closed, ((0, Bp - B), (0, 0), (0, 0)))

    flops = 2 * Bp * (Tp * two_p) * Dp * Qp
    bytes_accessed = 4 * Bp * (Tp * two_p * Dp + Dp * Qp + Qp + 3 * Tp * Qp)
    cost = pl.CostEstimate(flops=int(flops), transcendentals=0,
                           bytes_accessed=int(bytes_accessed))

    grid_spec = pltpu.PrefetchScalarGridSpec(
        num_scalar_prefetch=0,
        grid=(n_steps,),
        in_specs=[
            pl.BlockSpec((B_blk, Tp, Qp), lambda b: (b, 0, 0)),
            pl.BlockSpec((B_blk, Tp, two_p, Dp), lambda b: (b, 0, 0, 0)),
            pl.BlockSpec((B_blk, Dp, Qp), lambda b: (b, 0, 0)),
            pl.BlockSpec((B_blk, 1, Qp), lambda b: (b, 0, 0)),
        ],
        out_specs=[
            pl.BlockSpec((B_blk, Tp, Qp), lambda b: (b, 0, 0)),
            pl.BlockSpec((B_blk, Tp, Qp), lambda b: (b, 0, 0)),
        ],
    )
    dist_p, vid = pl.pallas_call(
        _curve_cost_kernel,
        grid_spec=grid_spec,
        out_shape=(jax.ShapeDtypeStruct((Bp, Tp, Qp), jnp.float32),
                   jax.ShapeDtypeStruct((Bp, Tp, Qp), jnp.int32)),
        compiler_params=pltpu.CompilerParams(dimension_semantics=("parallel",)),
        cost_estimate=cost,
    )(closed, cyc, pred_t, pred_sq)

    # finish the norm expansion (per-target constant) + cancellation clamp
    dist = jnp.maximum(dist_p[:B] + tgt_sq[:, :, None] * (1.0 / P), 0.0)
    return dist, vid[:B]


_pairwise_chamfer_batched = jax.jit(_pairwise_chamfer_core)


def pairwise_shape_chamfer_id_pallas(pred_points, tgt_points, is_closed):
    """pred_points [Q,P,3], tgt_points [T,P,3], is_closed [T] int
       -> (dist [Q,T] f32, vid [Q,T] i32)   (== torch pairwise_shape_chamfer_id)"""
    Q, P, _ = pred_points.shape
    T = tgt_points.shape[0]
    Tp = _round_up(max(T, 8), 8)
    tgt_pad = jnp.pad(tgt_points.astype(jnp.float32), ((0, Tp - T), (0, 0), (0, 0)))[None]
    closed_pad = jnp.pad(is_closed.astype(jnp.int32), (0, Tp - T))[None]
    dist, vid = _pairwise_chamfer_batched(pred_points[None], tgt_pad, closed_pad)
    return dist[0, :T, :Q].T, vid[0, :T, :Q].T


# ----------------------------------------------------------------------------
# Fused device-side cost assembly (single jit, single transfer to host)
# ----------------------------------------------------------------------------
@functools.partial(jax.jit, static_argnames=("using_prob",))
def _device_costs(pred_points, pred_logits, pred_type, closed_logits,
                  tgt_pad, closed_geom_pad, closed_gt_pad, labels_pad, weight_pad,
                  cost_class, cost_position, using_prob):
    B, Q = pred_points.shape[:2]
    Tp = tgt_pad.shape[1]

    valid_prob = jax.nn.softmax(pred_logits, axis=-1)     # [B, Q, 2]
    type_prob = jax.nn.softmax(pred_type, axis=-1)        # [B, Q, NTYPE]
    closed_prob = jax.nn.softmax(closed_logits, axis=-1)  # [B, Q, 2]

    dist, vid = _pairwise_chamfer_core(pred_points, tgt_pad, closed_geom_pad)

    lab = jnp.broadcast_to(labels_pad[:, None, :], (B, Q, Tp)).astype(jnp.int32)
    cls = jnp.broadcast_to(closed_gt_pad[:, None, :], (B, Q, Tp)).astype(jnp.int32)
    c_type = jnp.take_along_axis(type_prob, lab, axis=2)           # [B, Q, Tp]
    c_valid = jnp.broadcast_to(valid_prob[:, :, 0:1], (B, Q, Tp))  # [B, Q, Tp]
    c_closed = jnp.take_along_axis(closed_prob, cls, axis=2)       # [B, Q, Tp]
    if using_prob:
        cost_cls = -c_type - c_valid - c_closed
    else:
        cost_cls = (-jnp.log(c_type + 1e-6) - jnp.log(c_valid + 1e-6)
                    - jnp.log(c_closed + 1e-6))

    geom = jnp.transpose(dist[:, :, :Q], (0, 2, 1)) * weight_pad[:, None, :]
    C = cost_position * geom + cost_class * cost_cls               # [B, Q, Tp]
    return C, vid[:, :, :Q]                                        # vid: [B, Tp, Q]


# ----------------------------------------------------------------------------
# Host-side Hungarian algorithm (scipy when available, pure-python fallback)
# ----------------------------------------------------------------------------
def linear_sum_assignment_np(cost):
    cost = np.asarray(cost, dtype=np.float64)
    transposed = False
    if cost.shape[0] > cost.shape[1]:
        cost = cost.T
        transposed = True
    n, m = cost.shape  # n <= m
    INF = float("inf")
    u = [0.0] * (n + 1)
    v = [0.0] * (m + 1)
    p = [0] * (m + 1)
    way = [0] * (m + 1)
    for i in range(1, n + 1):
        p[0] = i
        j0 = 0
        minv = [INF] * (m + 1)
        used = [False] * (m + 1)
        while True:
            used[j0] = True
            i0 = p[j0]
            delta = INF
            j1 = 0
            for j in range(1, m + 1):
                if not used[j]:
                    cur = cost[i0 - 1][j - 1] - u[i0] - v[j]
                    if cur < minv[j]:
                        minv[j] = cur
                        way[j] = j0
                    if minv[j] < delta:
                        delta = minv[j]
                        j1 = j
            for j in range(m + 1):
                if used[j]:
                    u[p[j]] += delta
                    v[j] -= delta
                else:
                    minv[j] -= delta
            j0 = j1
            if p[j0] == 0:
                break
        while j0:
            j1 = way[j0]
            p[j0] = p[j1]
            j0 = j1
    rows, cols = [], []
    for j in range(1, m + 1):
        if p[j] != 0:
            rows.append(p[j] - 1)
            cols.append(j - 1)
    rows = np.array(rows, dtype=np.int64)
    cols = np.array(cols, dtype=np.int64)
    if transposed:
        rows, cols = cols, rows
    order = np.argsort(rows, kind="stable")
    return rows[order], cols[order]


def _linear_sum_assignment(cost):
    if _scipy_lsa is not None:
        r, c = _scipy_lsa(np.asarray(cost, dtype=np.float64))
        return np.asarray(r, dtype=np.int64), np.asarray(c, dtype=np.int64)
    return linear_sum_assignment_np(cost)


# ----------------------------------------------------------------------------
# Matcher (forward pass)
# ----------------------------------------------------------------------------
class HungarianMatcherCurvePallas:
    def __init__(self, batch_size, cost_class=1.0, cost_position=1.0,
                 using_prob_in_matching=False, flag_eval=False, val_th=0.5,
                 flag_vertid=True, flag_only_open=False):
        self.cost_class = cost_class
        self.cost_position = cost_position
        self.batch_size = batch_size
        self.using_prob_in_matching = using_prob_in_matching
        self.flag_eval = flag_eval
        self.val_th = val_th
        self.flag_vertid = flag_vertid
        self.flag_only_open = flag_only_open

    def __call__(self, outputs, target_curves_list):
        # TODO(synk): flag_eval=True branch (valid-query filtering by val_th) not implemented.
        assert not self.flag_eval
        pts = outputs["pred_curve_points"]
        B = self.batch_size
        Q = pts.shape[1]

        # --- pad ragged per-batch targets to a common Tp and stack once ---
        T_list = [int(target_curves_list[b]["labels"].shape[0]) for b in range(B)]
        Tp = _round_up(max(max(T_list), 8), 8)
        tgt_rows, cg_rows, cgt_rows, lab_rows, w_rows = [], [], [], [], []
        for b in range(B):
            T = T_list[b]
            tgt = target_curves_list[b]
            tgt_rows.append(jnp.pad(tgt["curve_points"].astype(jnp.float32),
                                    ((0, Tp - T), (0, 0), (0, 0))))
            flags = tgt["is_closed"].astype(jnp.int32)
            geom_flags = flags
            if not self.flag_vertid and self.flag_only_open:
                geom_flags = jnp.zeros_like(flags)      # open-only geometric cost
            cg_rows.append(jnp.pad(geom_flags, (0, Tp - T)))
            cgt_rows.append(jnp.pad(flags, (0, Tp - T)))
            lab_rows.append(jnp.pad(tgt["labels"].astype(jnp.int32), (0, Tp - T)))
            w_rows.append(jnp.pad(tgt["curve_length_weighting"].astype(jnp.float32),
                                  (0, Tp - T)))
        tgt_pad = jnp.stack(tgt_rows)          # [B, Tp, P, 3]
        closed_geom_pad = jnp.stack(cg_rows)   # [B, Tp]
        closed_gt_pad = jnp.stack(cgt_rows)    # [B, Tp]
        labels_pad = jnp.stack(lab_rows)       # [B, Tp]
        weight_pad = jnp.stack(w_rows)         # [B, Tp]

        # --- one jitted device pass (Pallas hot path + class costs), one transfer ---
        C_all, vid_all = _device_costs(
            pts, outputs["pred_curve_logits"], outputs["pred_curve_type"],
            outputs["closed_curve_logits"],
            tgt_pad, closed_geom_pad, closed_gt_pad, labels_pad, weight_pad,
            float(self.cost_class), float(self.cost_position),
            self.using_prob_in_matching)
        C_host, vid_host = jax.device_get((C_all, vid_all))   # [B,Q,Tp], [B,Tp,Q]

        # --- host-side Hungarian assignment ---
        indices, cycle_id = [], []
        for b in range(B):
            T = T_list[b]
            r, c = _linear_sum_assignment(np.asarray(C_host[b][:, :T], dtype=np.float64))
            indices.append((r.astype(np.int64), c.astype(np.int64)))
            if self.flag_vertid:
                vb = np.asarray(vid_host[b])   # [Tp, Q]  (target, query)
                cycle_id.append(np.array([vb[c[k], r[k]] for k in range(len(r))],
                                         dtype=np.int64))
        if not self.flag_vertid:
            return indices
        return indices, cycle_id


# ----------------------------------------------------------------------------
# Pure numpy reference for the geometric hot path (for a correctness check)
# ----------------------------------------------------------------------------
def _ref_pairwise(pred_points, tgt_points, is_closed):
    pred = np.asarray(pred_points, dtype=np.float64)
    tgt = np.asarray(tgt_points, dtype=np.float64)
    closed = np.asarray(is_closed)
    Q, P, _ = pred.shape
    pred_flat = pred.reshape(Q, 3 * P)
    dists, vids = [], []
    for i in range(tgt.shape[0]):
        tp = tgt[i]
        if closed[i]:
            rows = [np.roll(tp, j, axis=0) for j in range(P)]
            rows += [np.roll(tp[::-1], j, axis=0) for j in range(P)]
            cyc = np.stack(rows, 0).reshape(2 * P, 3 * P)
            sqd = ((cyc[:, None, :] - pred_flat[None, :, :]) ** 2).sum(-1) / P
            d = sqd.min(0)
            ids = sqd.argmin(0)
            ids = np.where(ids > P - 1, 2 * P - 1 - ids, ids)
        else:
            f = ((tp.reshape(-1)[None, :] - pred_flat) ** 2).sum(-1) / P
            r = ((tp[::-1].reshape(-1)[None, :] - pred_flat) ** 2).sum(-1) / P
            d = np.minimum(f, r)
            ids = np.zeros(Q, dtype=np.int64)
        dists.append(d)
        vids.append(ids)
    return np.stack(dists).T, np.stack(vids).T


# ----------------------------------------------------------------------------
if __name__ == "__main__":
    key = jax.random.PRNGKey(0)
    B, Q, P, NTYPE = 2, 16, 16, 6        # batch, num_queries, points-per-curve, curve types
    T_list = [5, 7]                      # targets per batch element

    keys = jax.random.split(key, 8)
    outputs = {
        "pred_curve_points": jax.random.normal(keys[0], (B, Q, P, 3), jnp.float32),
        "pred_curve_logits": jax.random.normal(keys[1], (B, Q, 2), jnp.float32),
        "pred_curve_type": jax.random.normal(keys[2], (B, Q, NTYPE), jnp.float32),
        "closed_curve_logits": jax.random.normal(keys[3], (B, Q, 2), jnp.float32),
    }
    target_curves_list = []
    for b in range(B):
        T = T_list[b]
        kk = jax.random.split(keys[4 + b], 4)
        target_curves_list.append({
            "labels": jax.random.randint(kk[0], (T,), 0, NTYPE, dtype=jnp.int32),
            "is_closed": jax.random.randint(kk[1], (T,), 0, 2, dtype=jnp.int32),
            "curve_points": jax.random.normal(kk[2], (T, P, 3), jnp.float32),
            "curve_length_weighting": jax.random.uniform(kk[3], (T,), jnp.float32, 0.5, 1.5),
        })

    matcher = HungarianMatcherCurvePallas(batch_size=B)  # default flags
    indices, cycle_ids = matcher(outputs, target_curves_list)

    # sanity-check the Pallas hot path against a numpy reference
    for b in range(B):
        geom, vid = pairwise_shape_chamfer_id_pallas(
            outputs["pred_curve_points"][b],
            target_curves_list[b]["curve_points"],
            target_curves_list[b]["is_closed"])
        geom, vid = jax.block_until_ready((geom, vid))
        ref_geom, ref_vid = _ref_pairwise(
            outputs["pred_curve_points"][b],
            target_curves_list[b]["curve_points"],
            target_curves_list[b]["is_closed"])
        assert np.allclose(np.asarray(geom), ref_geom, rtol=1e-3, atol=1e-3)
        assert np.array_equal(np.asarray(vid), ref_vid)
        assert len(indices[b][0]) == len(indices[b][1]) == min(Q, T_list[b])
        assert len(cycle_ids[b]) == min(Q, T_list[b])

    print("KERNEL_OK")
</pallas_src>

<mosaic_0001>
module attributes {stable_mosaic.version = 11 : i64} {
  func.func @_curve_cost_kernel(%arg0: i32, %arg1: memref<1x8x128xi32, #tpu.memory_space<vmem>>, %arg2: memref<1x8x32x128xf32, #tpu.memory_space<vmem>>, %arg3: memref<1x128x128xf32, #tpu.memory_space<vmem>>, %arg4: memref<1x1x128xf32, #tpu.memory_space<vmem>>, %arg5: memref<1x8x128xf32, #tpu.memory_space<vmem>>, %arg6: memref<1x8x128xi32, #tpu.memory_space<vmem>>) attributes {dimension_semantics = [#tpu.dimension_semantics<parallel>], iteration_bounds = array<i64: 2>, scalar_prefetch = 0 : i64, scratch_operands = 0 : i64, tpu.core_type = #tpu.core_type<tc>, window_params = [{transform_indices = @transform_0, window_bounds = array<i64: 1, 8, 128>}, {transform_indices = @transform_1, window_bounds = array<i64: 1, 8, 32, 128>}, {transform_indices = @transform_2, window_bounds = array<i64: 1, 128, 128>}, {transform_indices = @transform_3, window_bounds = array<i64: 1, 1, 128>}, {transform_indices = @transform_4, window_bounds = array<i64: 1, 8, 128>}, {transform_indices = @transform_5, window_bounds = array<i64: 1, 8, 128>}]} {
    %c0 = arith.constant 0 : index
    %c0_0 = arith.constant 0 : index
    %c0_1 = arith.constant 0 : index
    %c0_2 = arith.constant 0 : index
    %0 = vector.load %arg2[%c0, %c0_0, %c0_1, %c0_2] : memref<1x8x32x128xf32, #tpu.memory_space<vmem>>, vector<1x8x32x128xf32>
    %1 = vector.shape_cast %0 : vector<1x8x32x128xf32> to vector<1x256x128xf32>
    %c0_3 = arith.constant 0 : index
    %c0_4 = arith.constant 0 : index
    %c0_5 = arith.constant 0 : index
    %2 = vector.load %arg3[%c0_3, %c0_4, %c0_5] : memref<1x128x128xf32, #tpu.memory_space<vmem>>, vector<1x128x128xf32>
    %cst = arith.constant dense<0.000000e+00> : vector<1x256x128xf32>
    %3 = tpu.matmul %1, %2, %cst {dimension_numbers = #tpu.dot_dimension_numbers<[2], [1], [1], [2], [0, 0, 0, 1, 1, 2], [0], [0]>} : vector<1x256x128xf32>, vector<1x128x128xf32>, vector<1x256x128xf32> -> vector<1x256x128xf32>
    %c0_6 = arith.constant 0 : index
    %c0_7 = arith.constant 0 : index
    %c0_8 = arith.constant 0 : index
    %4 = vector.load %arg4[%c0_6, %c0_7, %c0_8] : memref<1x1x128xf32, #tpu.memory_space<vmem>>, vector<1x1x128xf32>
    %cst_9 = arith.constant 2.000000e+00 : f32
    %5 = vector.broadcast %cst_9 : f32 to vector<1x256x128xf32>
    %6 = arith.mulf %5, %3 : vector<1x256x128xf32>
    %7 = vector.broadcast %4 : vector<1x1x128xf32> to vector<1x256x128xf32>
    %8 = arith.subf %7, %6 : vector<1x256x128xf32>
    %cst_10 = arith.constant 6.250000e-02 : f32
    %9 = vector.broadcast %cst_10 : f32 to vector<1x256x128xf32>
    %10 = arith.mulf %8, %9 : vector<1x256x128xf32>
    %11 = vector.shape_cast %10 : vector<1x256x128xf32> to vector<1x8x32x128xf32>
    %cst_11 = arith.constant dense<0x7F800000> : vector<1x8x128xf32>
    %12 = vector.multi_reduction <minimumf>, %11, %cst_11 [2] : vector<1x8x32x128xf32> to vector<1x8x128xf32>
    %13 = tpu.iota {dimensions = array<i32: 2>} : vector<1x8x32x128xi32>
    %14 = vector.shape_cast %12 : vector<1x8x128xf32> to vector<1x8x1x128xf32>
    %15 = vector.broadcast %14 : vector<1x8x1x128xf32> to vector<1x8x32x128xf32>
    %16 = arith.cmpf ole, %11, %15 : vector<1x8x32x128xf32>
    %c32_i32 = arith.constant 32 : i32
    %17 = vector.broadcast %c32_i32 : i32 to vector<1x8x32x128xi32>
    %18 = arith.select %16, %13, %17 : vector<1x8x32x128xi1>, vector<1x8x32x128xi32>
    %cst_12 = arith.constant dense<2147483647> : vector<1x8x128xi32>
    %19 = vector.multi_reduction <minsi>, %18, %cst_12 [2] : vector<1x8x32x128xi32> to vector<1x8x128xi32>
    %c15_i32 = arith.constant 15 : i32
    %20 = vector.broadcast %c15_i32 : i32 to vector<1x8x128xi32>
    %21 = arith.cmpi sgt, %19, %20 : vector<1x8x128xi32>
    %c31_i32 = arith.constant 31 : i32
    %22 = vector.broadcast %c31_i32 : i32 to vector<1x8x128xi32>
    %23 = arith.subi %22, %19 : vector<1x8x128xi32>
    %24 = arith.select %21, %23, %19 : vector<1x8x128xi1>, vector<1x8x128xi32>
    %25 = vector.extract_strided_slice %11 {offsets = [0, 0, 0, 0], sizes = [1, 8, 1, 128], strides = [1, 1, 1, 1]} : vector<1x8x32x128xf32> to vector<1x8x1x128xf32>
    %26 = vector.shape_cast %25 : vector<1x8x1x128xf32> to vector<1x8x128xf32>
    %27 = vector.extract_strided_slice %11 {offsets = [0, 0, 16, 0], sizes = [1, 8, 1, 128], strides = [1, 1, 1, 1]} : vector<1x8x32x128xf32> to vector<1x8x1x128xf32>
    %28 = vector.shape_cast %27 : vector<1x8x1x128xf32> to vector<1x8x128xf32>
    %29 = arith.minimumf %26, %28 : vector<1x8x128xf32>
    %c0_13 = arith.constant 0 : index
    %c0_14 = arith.constant 0 : index
    %c0_15 = arith.constant 0 : index
    %30 = vector.load %arg1[%c0_13, %c0_14, %c0_15] : memref<1x8x128xi32, #tpu.memory_space<vmem>>, vector<1x8x128xi32>
    %c0_i32 = arith.constant 0 : i32
    %31 = vector.broadcast %c0_i32 : i32 to vector<1x8x128xi32>
    %32 = arith.cmpi sgt, %30, %31 : vector<1x8x128xi32>
    %33 = arith.select %32, %12, %29 : vector<1x8x128xi1>, vector<1x8x128xf32>
    %c0_16 = arith.constant 0 : index
    %c0_17 = arith.constant 0 : index
    %c0_18 = arith.constant 0 : index
    %34 = vector.load %arg5[%c0_16, %c0_17, %c0_18] : memref<1x8x128xf32, #tpu.memory_space<vmem>>, vector<1x8x128xf32>
    tpu.vector_store %arg5[%c0_16, %c0_17, %c0_18], %33 {strides = array<i32>} : memref<1x8x128xf32, #tpu.memory_space<vmem>>, vector<1x8x128xf32>,
    %c0_i32_19 = arith.constant 0 : i32
    %35 = vector.broadcast %c0_i32_19 : i32 to vector<1x8x128xi32>
    %36 = arith.select %32, %24, %35 : vector<1x8x128xi1>, vector<1x8x128xi32>
    %c0_20 = arith.constant 0 : index
    %c0_21 = arith.constant 0 : index
    %c0_22 = arith.constant 0 : index
    %37 = vector.load %arg6[%c0_20, %c0_21, %c0_22] : memref<1x8x128xi32, #tpu.memory_space<vmem>>, vector<1x8x128xi32>
    tpu.vector_store %arg6[%c0_20, %c0_21, %c0_22], %36 {strides = array<i32>} : memref<1x8x128xi32, #tpu.memory_space<vmem>>, vector<1x8x128xi32>,
    return
  }
  func.func @transform_0(%arg0: i32) -> (i32, i32, i32) {
    %c0_i32 = arith.constant 0 : i32
    %c0_i32_0 = arith.constant 0 : i32
    %c0_i32_1 = arith.constant 0 : i32
    return %arg0, %c0_i32, %c0_i32_0 : i32, i32, i32
  }
  func.func @transform_1(%arg0: i32) -> (i32, i32, i32, i32) {
    %c0_i32 = arith.constant 0 : i32
    %c0_i32_0 = arith.constant 0 : i32
    %c0_i32_1 = arith.constant 0 : i32
    %c0_i32_2 = arith.constant 0 : i32
    return %arg0, %c0_i32, %c0_i32_0, %c0_i32_1 : i32, i32, i32, i32
  }
  func.func @transform_2(%arg0: i32) -> (i32, i32, i32) {
    %c0_i32 = arith.constant 0 : i32
    %c0_i32_0 = arith.constant 0 : i32
    %c0_i32_1 = arith.constant 0 : i32
    return %arg0, %c0_i32, %c0_i32_0 : i32, i32, i32
  }
  func.func @transform_3(%arg0: i32) -> (i32, i32, i32) {
    %c0_i32 = arith.constant 0 : i32
    %c0_i32_0 = arith.constant 0 : i32
    %c0_i32_1 = arith.constant 0 : i32
    return %arg0, %c0_i32, %c0_i32_0 : i32, i32, i32
  }
  func.func @transform_4(%arg0: i32) -> (i32, i32, i32) {
    %c0_i32 = arith.constant 0 : i32
    %c0_i32_0 = arith.constant 0 : i32
    %c0_i32_1 = arith.constant 0 : i32
    return %arg0, %c0_i32, %c0_i32_0 : i32, i32, i32
  }
  func.func @transform_5(%arg0: i32) -> (i32, i32, i32) {
    %c0_i32 = arith.constant 0 : i32
    %c0_i32_0 = arith.constant 0 : i32
    %c0_i32_1 = arith.constant 0 : i32
    return %arg0, %c0_i32, %c0_i32_0 : i32, i32, i32
  }
}

</mosaic_0001>

<bundles_post_ra>
// kernel: _device_costs.1
= control target key start
LH: loop header
LB: loop body
LE: loop exit
PB: predicated region body
PF: predicated region fallthrough
CT: control target
= control target key end

     0   :  { %11 = vsyncpa [#allocation3], 0  ;;  %s2053_s0 = inlined_call_operand.vmem [shape: s32[2,8,128], index: 0, kind: input, shape index: {}]   ;;  %s2054_s1 = inlined_call_operand.vmem [shape: f32[2,8,32,128], index: 1, kind: input, shape index: {}]   ;;  %s2055_s2 = inlined_call_operand.vmem [shape: f32[2,128,128], index: 2, kind: input, shape index: {}]   ;;  %s2056_s3 = inlined_call_operand.vmem [shape: f32[2,1,128], index: 3, kind: input, shape index: {}]   ;;  %s2057_s4 = inlined_call_operand.vmem [shape: f32[2,8,128], index: 4, kind: output, shape index: {0}]   ;;  %s2058_s5 = inlined_call_operand.hbm [shape: s32[2,8,128], index: 5, kind: output, shape index: {1}]  }
   0x1   :  { %13 = vsyncpa [#allocation3 + $0x1], 0  ;;  %s1460_s18 = smov 0   ;;  %s1462_s19 = smov 0  }
   0x2   :  { %s1464_s20 = smov 0   ;;  %s1466_s21 = smov 0  }
   0x3 LB: > { %s1481_s22 = sadd.s32 4294967295, %s1427_s21   ;;  %s1150_s23 = sadd.s32 4294967294, %s1427_s21   ;;  %s1427_s21 = sphi %s1466_s21, %s2080_s21   ;;  %s1423_s20 = sphi %s1464_s20, %s2079_s20   ;;  %s1419_s19 = sphi %s1462_s19, %s2078_s19   ;;  %s1415_s18 = sphi %s1460_s18, %s2077_s18  }
   0x4   : > { %s1485_s24 = sadd.s32 1, %s1427_s21   ;;  %s156_s25 = sadd.s32 1, %s1423_s20 }
   0x5   : > { %s153_s26 = ssub.s32 %s1427_s21, %s1485_s24  ;;  %p166_p0 = scmp.ne.s32.totalorder %s1423_s20, %s1419_s19 }
   0x6   : > { %p154_p1 = scmp.eq.s32.totalorder %s153_s26, 0  ;;  %p167_p2 = scmp.eq.s32.totalorder %s1481_s22, 1 }
   0x7   : > { %p172_p3 = scmp.ne.s32.totalorder %s1419_s19, %s1415_s18  ;;  %p173_p4 = scmp.eq.s32.totalorder %s1150_s23, 1 }
   0x8   : > { %s1496_s27 = scalar_select %p154_p1, %s1423_s20, %s156_s25  }
   0x9   : > { %p1498_p5 = por %p167_p2, %p166_p0  ;;  %p1502_p6 = por %p173_p4, %p172_p3 }
   0xa   : > { %p1153_p7 = scmp.ge.s32.totalorder %s1427_s21, 1  ;;  %p220_p8 = scmp.lt.s32.totalorder %s1427_s21, 3 }
   0xc   : > { %p221_p9 = pnand %p1153_p7, %p220_p8 }
   0xd   : > { %p264_p10 = scmp.lt.s32.totalorder (!%p221_p9), %s1481_s22, 1 }
   0xe   : > { %224 = sbr.rel (%p221_p9) target bundleno = 378 (0x17a), region = 36 }
  0x13   : > { %s1510_s30 = scalar_select %p264_p10, %s1481_s22, 1 }
  0x15   : > { %s1167_s6 = sshll.u32 %s1510_s30, 7  ;;  %s1166_s10 = sshll.u32 %s1510_s30, 8 }
  0x16   : > { %s1516_s9 = scalar_lea.vmem %s2055_s2, %s1167_s6  ;;  %s1537_s13 = scalar_lea.vmem %s2054_s1, %s1166_s10 }
  0x17   : > { %v332_v0 = vld [vmem:[%s1516_s9 + $0x78] sm:$0xff]  ;;  %v331_v1 = vld [vmem:[%s1516_s9 + $0x70] sm:$0xff]  ;;  %v330_v2 = vld [vmem:[%s1516_s9 + $0x68] sm:$0xff]  ;;  %s280_s16 = scalar_lea.vmem %s2056_s3, %s1510_s30  ;;  %s1155_s17 = sshll.u32 %s1510_s30, 3 }
  0x18   : > { %1216 = vmatprep.subr.mxu0 %v332_v0  ;;  %1296 = vmatprep.subr.mxu1 %v332_v0  ;;  %v329_v3 = vld [vmem:[%s1516_s9 + $0x60] sm:$0xff]  ;;  %v328_v4 = vld [vmem:[%s1516_s9 + $0x58] sm:$0xff]  ;;  %v327_v5 = vld [vmem:[%s1516_s9 + $0x50] sm:$0xff]  ;;  %s267_s26 = scalar_lea.vmem %s2053_s0, %s1155_s17  ;;  %s284_s8 = scalar_lea.vmem %s2057_s4, %s1155_s17 }
  0x19   : > { %1217 = vmatpush3.msra.mxu0 %v332_v0  ;;  %1312 = vmatpush3.msra.mxu1 %v332_v0  ;;  %v326_v6 = vld [vmem:[%s1516_s9 + $0x48] sm:$0xff]  ;;  %v325_v7 = vld [vmem:[%s1516_s9 + $0x40] sm:$0xff]  ;;  %v324_v8 = vld [vmem:[%s1516_s9 + $0x38] sm:$0xff]  ;;  %s261_s30 = sand.u32 1, %s1419_s19   ;;  %s1163_s10 = sshll.u32 %s1481_s22, 7 }
  0x1a   : > { %1218 = vmatprep.subr.mxu0 %v331_v1  ;;  %1297 = vmatprep.subr.mxu1 %v331_v1  ;;  %v323_v9 = vld [vmem:[%s1516_s9 + $0x30] sm:$0xff]  ;;  %v322_v10 = vld [vmem:[%s1516_s9 + $0x28] sm:$0xff]  ;;  %v321_v11 = vld [vmem:[%s1516_s9 + $0x20] sm:$0xff]  ;;  %s2014_s15 = scalar_lea.hbm %s2058_s5, %s1163_s10  ;;  %s1018_s22 = scalar_lea.sflag [#allocation3], %s261_s30 }
  0x1b   : > { %1219 = vmatpush3.msra.mxu0 %v331_v1  ;;  %1313 = vmatpush3.msra.mxu1 %v331_v1  ;;  %v320_v12 = vld [vmem:[%s1516_s9 + $0x18] sm:$0xff]  ;;  %v319_v13 = vld [vmem:[%s1516_s9 + $0x10] sm:$0xff]  ;;  %v318_v14 = vld [vmem:[%s1516_s9 + $0x8] sm:$0xff]  ;;  %s1429_s17 = smov [#allocation2]  }
  0x1c   : > { %1220 = vmatprep.subr.mxu0 %v330_v2  ;;  %1298 = vmatprep.subr.mxu1 %v330_v2  ;;  %v317_v15 = vld [vmem:[%s1516_s9] sm:$0xff]  ;;  %v286_v18 = vld [vmem:[%s1537_s13 + $0x8] sm:$0xff]  ;;  %v287_v20 = vld [vmem:[%s1537_s13 + $0x10] sm:$0xff]  ;;  %s1999_s9 = sshll.u32 %s261_s30, 3  ;;  %s1371_s23 = sshll.u32 %s1429_s17, 4  ;;  %s1372_s23 = int_to_ptr.vmem [resolvable:$false] %s1371_s23 }
  0x1d   : > { %1221 = vmatpush3.msra.mxu0 %v330_v2  ;;  %1314 = vmatpush3.msra.mxu1 %v330_v2  ;;  %v285_v16 = vld [vmem:[%s1537_s13] sm:$0xff]  ;;  %v302_v19 = vld [vmem:[%s1537_s13 + $0x88] sm:$0xff]  ;;  %v303_v21 = vld [vmem:[%s1537_s13 + $0x90] sm:$0xff]  ;;  %s263_s11 = scalar_lea.vmem [#allocation2], %s1999_s9  ;;  %s1373_s25 = scalar_lea.vmem %s1372_s23, 256 }
  0x1e   : > { %1222 = vmatprep.subr.mxu0 %v329_v3  ;;  %1299 = vmatprep.subr.mxu1 %v329_v3  ;;  %v301_v17 = vld [vmem:[%s1537_s13 + $0x80] sm:$0xff]  ;;  %v288_v22 = vld [vmem:[%s1537_s13 + $0x18] sm:$0xff]  ;;  %v290_v26 = vld [vmem:[%s1537_s13 + $0x28] sm:$0xff]  ;;  %s1034_s12 = sshll.u32 %s263_s11, 4  ;;  %s1035_s12 = int_to_ptr.vmem [resolvable:$true] %s1034_s12 }
  0x1f   : > { %1223 = vmatpush3.msra.mxu0 %v329_v3  ;;  %1315 = vmatpush3.msra.mxu1 %v329_v3  ;;  %v304_v23 = vld [vmem:[%s1537_s13 + $0x98] sm:$0xff]  ;;  %v289_v24 = vld [vmem:[%s1537_s13 + $0x20] sm:$0xff]  ;;  %v306_v27 = vld [vmem:[%s1537_s13 + $0xa8] sm:$0xff]  ;;  %p1374_p0 = scmp.lt.s32.totalorder %s1035_s12, %s1372_s23 }
  0x20   : > { %1224 = vmatprep.subr.mxu0 %v328_v4  ;;  %1300 = vmatprep.subr.mxu1 %v328_v4  ;;  %v305_v25 = vld [vmem:[%s1537_s13 + $0xa0] sm:$0xff]  ;;  %v291_v28 = vld [vmem:[%s1537_s13 + $0x30] sm:$0xff]  ;;  %v292_v30 = vld [vmem:[%s1537_s13 + $0x38] sm:$0xff] }
  0x21   : > { %1225 = vmatpush3.msra.mxu0 %v328_v4  ;;  %1316 = vmatpush3.msra.mxu1 %v328_v4  ;;  %v307_v29 = vld [vmem:[%s1537_s13 + $0xb0] sm:$0xff]  ;;  %v308_v31 = vld [vmem:[%s1537_s13 + $0xb8] sm:$0xff]  ;;  %v293_v32 = vld [vmem:[%s1537_s13 + $0x40] sm:$0xff] }
  0x22   : > { %1226 = vmatprep.subr.mxu0 %v327_v5  ;;  %1301 = vmatprep.subr.mxu1 %v327_v5  ;;  %v309_v33 = vld [vmem:[%s1537_s13 + $0xc0] sm:$0xff]  ;;  %v294_v34 = vld [vmem:[%s1537_s13 + $0x48] sm:$0xff]  ;;  %v295_v36 = vld [vmem:[%s1537_s13 + $0x50] sm:$0xff] }
  0x23   : > { %1227 = vmatpush3.msra.mxu0 %v327_v5  ;;  %1317 = vmatpush3.msra.mxu1 %v327_v5  ;;  %v310_v35 = vld [vmem:[%s1537_s13 + $0xc8] sm:$0xff]  ;;  %v311_v37 = vld [vmem:[%s1537_s13 + $0xd0] sm:$0xff]  ;;  %v296_v38 = vld [vmem:[%s1537_s13 + $0x58] sm:$0xff] }
  0x24   : > { %1228 = vmatprep.subr.mxu0 %v326_v6  ;;  %1302 = vmatprep.subr.mxu1 %v326_v6  ;;  %v312_v39 = vld [vmem:[%s1537_s13 + $0xd8] sm:$0xff]  ;;  %v297_v40 = vld [vmem:[%s1537_s13 + $0x60] sm:$0xff]  ;;  %v298_v42 = vld [vmem:[%s1537_s13 + $0x68] sm:$0xff] }
  0x25   : > { %1229 = vmatpush3.msra.mxu0 %v326_v6  ;;  %1318 = vmatpush3.msra.mxu1 %v326_v6  ;;  %v313_v41 = vld [vmem:[%s1537_s13 + $0xe0] sm:$0xff]  ;;  %v314_v43 = vld [vmem:[%s1537_s13 + $0xe8] sm:$0xff]  ;;  %v299_v44 = vld [vmem:[%s1537_s13 + $0x70] sm:$0xff] }
  0x26   : > { %1230 = vmatprep.subr.mxu0 %v325_v7  ;;  %1303 = vmatprep.subr.mxu1 %v325_v7  ;;  %v315_v45 = vld [vmem:[%s1537_s13 + $0xf0] sm:$0xff]  ;;  %v300_v46 = vld [vmem:[%s1537_s13 + $0x78] sm:$0xff]  ;;  %v1576_v50 = vld [vmem:[%s280_s16] ss:$0 sm:$0xff]  ;;  %s1367_s16 = scalar_lea.vmem %s1035_s12, 128 }
  0x27   : > { %1231 = vmatpush3.msra.mxu0 %v325_v7  ;;  %1319 = vmatpush3.msra.mxu1 %v325_v7  ;;  %v316_v47 = vld [vmem:[%s1537_s13 + $0xf8] sm:$0xff]  ;;  %p1368_p11 = scmp.ne.s32.totalorder %s1035_s12, %s1367_s16  ;;  %p1375_p1 = scmp.lt.s32.totalorder %s1373_s25, %s1367_s16 }
  0x28   : > { %1232 = vmatprep.subr.mxu0 %v324_v8  ;;  %1304 = vmatprep.subr.mxu1 %v324_v8 }
  0x29   : > { %1233 = vmatpush3.msra.mxu0 %v324_v8  ;;  %1320 = vmatpush3.msra.mxu1 %v324_v8  ;;  %p1369_p12 = pnand %p1368_p11, %p1498_p5  ;;  %p1376_p2 = por %p1375_p1, %p1374_p0 }
  0x2a   : > { %1234 = vmatprep.subr.mxu0 %v323_v9  ;;  %1305 = vmatprep.subr.mxu1 %v323_v9 }
  0x2b   : > { %1235 = vmatpush3.msra.mxu0 %v323_v9  ;;  %1321 = vmatpush3.msra.mxu1 %v323_v9  ;;  %p1370_p13 = pneg %p1369_p12 }
  0x2c   : > { %1236 = vmatprep.subr.mxu0 %v322_v10  ;;  %1306 = vmatprep.subr.mxu1 %v322_v10 }
  0x2d   : > { %1237 = vmatpush3.msra.mxu0 %v322_v10  ;;  %1322 = vmatpush3.msra.mxu1 %v322_v10  ;;  %p1377_p3 = pnand %p1376_p2, %p1370_p13 }
  0x2e   : > { %1238 = vmatprep.subr.mxu0 %v321_v11  ;;  %1307 = vmatprep.subr.mxu1 %v321_v11 }
  0x2f   : > { %1239 = vmatpush3.msra.mxu0 %v321_v11  ;;  %1323 = vmatpush3.msra.mxu1 %v321_v11 }
  0x30   : > { %1240 = vmatprep.subr.mxu0 %v320_v12  ;;  %1308 = vmatprep.subr.mxu1 %v320_v12 }
  0x31   : > { %1241 = vmatpush3.msra.mxu0 %v320_v12  ;;  %1324 = vmatpush3.msra.mxu1 %v320_v12 }
  0x32   : > { %1242 = vmatprep.subr.mxu0 %v319_v13  ;;  %1309 = vmatprep.subr.mxu1 %v319_v13 }
  0x33   : > { %1243 = vmatpush3.msra.mxu0 %v319_v13  ;;  %1325 = vmatpush3.msra.mxu1 %v319_v13 }
  0x34   : > { %1244 = vmatprep.subr.mxu0 %v318_v14  ;;  %1310 = vmatprep.subr.mxu1 %v318_v14 }
  0x35   : > { %1245 = vmatpush3.msra.mxu0 %v318_v14  ;;  %1326 = vmatpush3.msra.mxu1 %v318_v14 }
  0x36   : > { %1246 = vmatprep.subr.mxu0 %v317_v15  ;;  %1311 = vmatprep.subr.mxu1 %v317_v15 }
  0x37   : > { %1247 = vmatpush3.msra.mxu0 %v317_v15  ;;  %1327 = vmatpush3.msra.mxu1 %v317_v15 }
  0x38   : > { %1248 = vmatprep.mubr.f32.mxu0 %v285_v16  ;;  %1272 = vmatprep.mubr.f32.mxu1 %v301_v17 }
  0x39   : > { %1249 = vmatmul.mubr.f32.vlgmr.msra.gmra.mxu0 %v286_v18  ;;  %1273 = vmatmul.mubr.f32.vlgmr.msra.gmra.mxu1 %v302_v19 }
  0x3a   : > { %1251 = vmatprep.mubr.f32.mxu0 %v287_v20  ;;  %1275 = vmatprep.mubr.f32.mxu1 %v303_v21 }
  0x3d   : > { %1252 = vmatmul.mubr.f32.gmra.mxu0 %v288_v22  ;;  %1276 = vmatmul.mubr.f32.gmra.mxu1 %v304_v23 }
  0x3e   : > { %1254 = vmatprep.mubr.f32.mxu0 %v289_v24  ;;  %1278 = vmatprep.mubr.f32.mxu1 %v305_v25 }
  0x41   : > { %1255 = vmatmul.mubr.f32.gmra.mxu0 %v290_v26  ;;  %1279 = vmatmul.mubr.f32.gmra.mxu1 %v306_v27 }
  0x42   : > { %1257 = vmatprep.mubr.f32.mxu0 %v291_v28  ;;  %1281 = vmatprep.mubr.f32.mxu1 %v307_v29 }
  0x45   : > { %1258 = vmatmul.mubr.f32.gmra.mxu0 %v292_v30  ;;  %1282 = vmatmul.mubr.f32.gmra.mxu1 %v308_v31 }
  0x46   : > { %1260 = vmatprep.mubr.f32.mxu0 %v293_v32  ;;  %1284 = vmatprep.mubr.f32.mxu1 %v309_v33 }
  0x49   : > { %1261 = vmatmul.mubr.f32.gmra.mxu0 %v294_v34  ;;  %1285 = vmatmul.mubr.f32.gmra.mxu1 %v310_v35 }
  0x4a   : > { %1263 = vmatprep.mubr.f32.mxu0 %v295_v36  ;;  %1287 = vmatprep.mubr.f32.mxu1 %v311_v37 }
  0x4d   : > { %1264 = vmatmul.mubr.f32.gmra.mxu0 %v296_v38  ;;  %1288 = vmatmul.mubr.f32.gmra.mxu1 %v312_v39 }
  0x4e   : > { %1266 = vmatprep.mubr.f32.mxu0 %v297_v40  ;;  %1290 = vmatprep.mubr.f32.mxu1 %v313_v41 }
  0x51   : > { %1267 = vmatmul.mubr.f32.gmra.mxu0 %v298_v42  ;;  %1291 = vmatmul.mubr.f32.gmra.mxu1 %v314_v43 }
  0x52   : > { %1269 = vmatprep.mubr.f32.mxu0 %v299_v44  ;;  %1293 = vmatprep.mubr.f32.mxu1 %v315_v45 }
  0x55   : > { %1270 = vmatmul.mubr.f32.gmra.mxu0 %v300_v46  ;;  %1294 = vmatmul.mubr.f32.gmra.mxu1 %v316_v47  ;;  %v733_v46 = vlaneseq }
  0xf9   : > { %v1250_v48 = vpop.f32.mrf.mxu0  ;;  %v1274_v49 = vpop.f32.mrf.mxu1 }
  0xfa   : > { %v560_v51 = vmul.f32 2.0, %v1250_v48  ;;  %v576_v52 = vmul.f32 2.0, %v1274_v49 }
  0xfb   : > { %v399_v53 = vpop.f32.mrf.mxu0  ;;  %v479_v54 = vpop.f32.mrf.mxu1 }
  0xfc   : > { %v614_v55 = vsub.f32 %v1576_v50, %v576_v52  ;;  %v559_v56 = vmul.f32 2.0, %v399_v53  ;;  %v575_v57 = vmul.f32 2.0, %v479_v54  ;;  %v598_v58 = vsub.f32 %v1576_v50, %v560_v51 }
  0xfd   : > { %v1253_v59 = vpop.f32.mrf.mxu0  ;;  %v1277_v60 = vpop.f32.mrf.mxu1 }
  0xfe   : > { %v1580_v61 = vmul.f32 0.0625, %v614_v55  ;;  %v597_v62 = vsub.f32 %v1576_v50, %v559_v56  ;;  %v613_v63 = vsub.f32 %v1576_v50, %v575_v57  ;;  %v562_v0 = vmul.f32 2.0, %v1253_v59 }
  0xff   : > { %v578_v1 = vmul.f32 2.0, %v1277_v60  ;;  %v409_v2 = vpop.f32.mrf.mxu0  ;;  %v489_v3 = vpop.f32.mrf.mxu1  ;;  %v1588_v8 = vmul.f32 0.0625, %v598_v58 }
 0x100   : > { %v1584_v4 = vmul.f32 0.0625, %v597_v62  ;;  %v1586_v5 = vmul.f32 0.0625, %v613_v63  ;;  %v561_v6 = vmul.f32 2.0, %v409_v2  ;;  %v577_v7 = vmul.f32 2.0, %v489_v3 }
 0x101   : > { %v616_v9 = vsub.f32 %v1576_v50, %v578_v1  ;;  %v1256_v10 = vpop.f32.mrf.mxu0  ;;  %v1280_v11 = vpop.f32.mrf.mxu1  ;;  %v600_v13 = vsub.f32 %v1576_v50, %v562_v0  ;;  %v1634_v0 = vshrl.u32 %v733_v46, 7 }
 0x102   : > { %v697_v12 = vmin.f32 %v1586_v5, %v1580_v61  ;;  %v599_v14 = vsub.f32 %v1576_v50, %v561_v6  ;;  %v615_v15 = vsub.f32 %v1576_v50, %v577_v7  ;;  %v661_v16 = vmin.f32 %v1584_v4, %v1588_v8 }
 0x103   : > { %v1598_v17 = vmul.f32 0.0625, %v616_v9  ;;  %v564_v18 = vmul.f32 2.0, %v1256_v10  ;;  %v580_v19 = vmul.f32 2.0, %v1280_v11  ;;  %v419_v20 = vpop.f32.mrf.mxu0  ;;  %v499_v21 = vpop.f32.mrf.mxu1  ;;  %v1605_v29 = vmul.f32 0.0625, %v600_v13 }
 0x104   : > { %v1600_v22 = vmul.f32 0.0625, %v599_v14  ;;  %v1602_v23 = vmul.f32 0.0625, %v615_v15  ;;  %v563_v24 = vmul.f32 2.0, %v419_v20  ;;  %v579_v25 = vmul.f32 2.0, %v499_v21 }
 0x105   : > { %v618_v26 = vsub.f32 %v1576_v50, %v580_v19  ;;  %v1259_v27 = vpop.f32.mrf.mxu0  ;;  %v1283_v28 = vpop.f32.mrf.mxu1  ;;  %v602_v32 = vsub.f32 %v1576_v50, %v564_v18  ;;  %v1644_v14 = vadd.s32 8, %v1634_v0 }
 0x106   : > { %v662_v30 = vmin.f32 %v661_v16, %v1600_v22  ;;  %v698_v31 = vmin.f32 %v697_v12, %v1602_v23  ;;  %v601_v33 = vsub.f32 %v1576_v50, %v563_v24  ;;  %v617_v34 = vsub.f32 %v1576_v50, %v579_v25 }
 0x107   : > { %v429_v35 = vpop.f32.mrf.mxu0  ;;  %v509_v36 = vpop.f32.mrf.mxu1  ;;  %v1614_v39 = vmul.f32 0.0625, %v618_v26  ;;  %v566_v40 = vmul.f32 2.0, %v1259_v27  ;;  %v582_v43 = vmul.f32 2.0, %v1283_v28  ;;  %v1620_v49 = vmul.f32 0.0625, %v602_v32 }
 0x108   : > { %v663_v37 = vmin.f32 %v662_v30, %v1605_v29  ;;  %v699_v38 = vmin.f32 %v698_v31, %v1598_v17  ;;  %v1616_v41 = vmul.f32 0.0625, %v601_v33  ;;  %v1618_v42 = vmul.f32 0.0625, %v617_v34 }
 0x109   : > { %v565_v44 = vmul.f32 2.0, %v429_v35  ;;  %v581_v48 = vmul.f32 2.0, %v509_v36  ;;  %v604_v51 = vsub.f32 %v1576_v50, %v566_v40  ;;  %v620_v52 = vsub.f32 %v1576_v50, %v582_v43  ;;  %v1262_v11 = vpop.f32.mrf.mxu0  ;;  %v1286_v24 = vpop.f32.mrf.mxu1 }
 0x10a   : > { %v664_v45 = vrot.slane %v663_v37, 4  ;;  %v700_v47 = vrot.slane %v699_v38, 4  ;;  %v706_v56 = vmin.f32 %v1618_v42, %v1614_v39  ;;  %v670_v58 = vmin.f32 %v1616_v41, %v1620_v49 }
 0x10b   : > { %v603_v53 = vsub.f32 %v1576_v50, %v565_v44  ;;  %v619_v57 = vsub.f32 %v1576_v50, %v581_v48  ;;  %v1636_v1 = vmul.f32 0.0625, %v604_v51  ;;  %v1638_v2 = vmul.f32 0.0625, %v620_v52  ;;  %v439_v20 = vpop.f32.mrf.mxu0  ;;  %v519_v35 = vpop.f32.mrf.mxu1 }
 0x10c   : > { %v665_v54 = vmin.f32 %v663_v37, %v664_v45  ;;  %v701_v55 = vmin.f32 %v699_v38, %v700_v47  ;;  %v568_v21 = vmul.f32 2.0, %v1262_v11  ;;  %v584_v30 = vmul.f32 2.0, %v1286_v24 }
 0x10d   : > { %v1630_v59 = vmul.f32 0.0625, %v603_v53  ;;  %v1632_v63 = vmul.f32 0.0625, %v619_v57  ;;  %v567_v31 = vmul.f32 2.0, %v439_v20  ;;  %v1265_v33 = vpop.f32.mrf.mxu0  ;;  %v1664_v34 = vadd.s32 16, %v1634_v0  ;;  %v1289_v52 = vpop.f32.mrf.mxu1 }
 0x10e   : > { %v666_v60 = vrot.slane %v665_v54, 2  ;;  %v702_v62 = vrot.slane %v701_v55, 2  ;;  %v606_v38 = vsub.f32 %v1576_v50, %v568_v21  ;;  %v1674_v47 = vadd.s32 24, %v1634_v0 }
 0x10f   : > { %v671_v3 = vmin.f32 %v670_v58, %v1630_v59  ;;  %v707_v9 = vmin.f32 %v706_v56, %v1632_v63  ;;  %v605_v40 = vsub.f32 %v1576_v50, %v567_v31  ;;  %v449_v46 = vpop.f32.mrf.mxu0  ;;  %v583_v51 = vmul.f32 2.0, %v519_v35 }
 0x110   : > { %v667_v6 = vmin.f32 %v665_v54, %v666_v60  ;;  %v703_v7 = vmin.f32 %v701_v55, %v702_v62  ;;  %v1677_v56 = vmul.f32 0.0625, %v606_v38  ;;  %v569_v60 = vmul.f32 2.0, %v449_v46 }
 0x111   : > { %v672_v10 = vmin.f32 %v671_v3, %v1636_v1  ;;  %v708_v16 = vmin.f32 %v707_v9, %v1638_v2  ;;  %v1684_v3 = vmul.f32 0.0625, %v605_v40  ;;  %v586_v9 = vmul.f32 2.0, %v1289_v52 }
 0x112   : > { %v668_v12 = vrot.slane %v667_v6, 1  ;;  %v704_v13 = vrot.slane %v703_v7, 1 }
 0x113   : > { %v673_v15 = vrot.slane %v672_v10, 4  ;;  %v709_v28 = vrot.slane %v708_v16, 4 }
 0x114   : > { %v1647_v18 = vmin.f32 %v667_v6, %v668_v12  ;;  %v1649_v19 = vmin.f32 %v703_v7, %v704_v13  ;;  %v570_v6 = vmul.f32 2.0, %v1265_v33  ;;  %v621_v7 = vsub.f32 %v1576_v50, %v583_v51 }
 0x115   : > { %v674_v27 = vmin.f32 %v672_v10, %v673_v15  ;;  %v710_v37 = vmin.f32 %v708_v16, %v709_v28  ;;  %v529_v10 = vpop.f32.mrf.mxu1  ;;  %v607_v15 = vsub.f32 %v1576_v50, %v569_v60 }
 0x116   : > { %vm738_vm0 = vcmp.le.f32.partialorder %v1584_v4, %v1647_v18  ;;  %vm739_vm1 = vcmp.le.f32.partialorder %v1588_v8, %v1647_v18  ;;  %vm754_vm2 = vcmp.le.f32.partialorder %v1586_v5, %v1649_v19  ;;  %vm755_vm3 = vcmp.le.f32.partialorder %v1580_v61, %v1649_v19 }
 0x117   : > { %v770_v25 = vsel %vm738_vm0, %v1634_v0, 32  ;;  %v771_v26 = vsel %vm739_vm1, %v1644_v14, 32  ;;  %v786_v32 = vsel %vm754_vm2, %v1634_v0, 32  ;;  %v787_v8 = vsel %vm755_vm3, %v1644_v14, 32  ;;  %v1292_v60 = vpop.f32.mrf.mxu1 }
 0x118   : > { %vm802_vm4 = vcmp.lt.s32.totalorder %v770_v25, %v771_v26  ;;  %vm862_vm5 = vcmp.lt.s32.totalorder %v786_v32, %v787_v8  ;;  %v675_v36 = vrot.slane %v674_v27, 2  ;;  %vm740_vm6 = vcmp.le.f32.partialorder %v1600_v22, %v1647_v18 }
 0x119   : > { %v622_v61 = vsub.f32 %v1576_v50, %v584_v30  ;;  %v803_v43 = vsel %vm802_vm4, %v770_v25, %v771_v26  ;;  %vm756_vm7 = vcmp.le.f32.partialorder %v1602_v23, %v1649_v19  ;;  %v711_v45 = vrot.slane %v710_v37, 2 }
 0x11a   : > { %v676_v44 = vmin.f32 %v674_v27, %v675_v36  ;;  %v863_v48 = vsel %vm862_vm5, %v786_v32, %v787_v8  ;;  %v772_v53 = vsel %vm740_vm6, %v1664_v34, 32  ;;  %v788_v57 = vsel %vm756_vm7, %v1664_v34, 32 }
 0x11b   : > { %v712_v55 = vmin.f32 %v710_v37, %v711_v45  ;;  %vm804_vm8 = vcmp.lt.s32.totalorder %v803_v43, %v772_v53  ;;  %v1680_v58 = vmul.f32 0.0625, %v622_v61  ;;  %vm864_vm9 = vcmp.lt.s32.totalorder %v863_v48, %v788_v57 }
 0x11c   : > { %v677_v54 = vrot.slane %v676_v44, 1  ;;  %vm741_vm10 = vcmp.le.f32.partialorder %v1605_v29, %v1647_v18  ;;  %vm757_vm11 = vcmp.le.f32.partialorder %v1598_v17, %v1649_v19  ;;  %v805_v11 = vsel %vm804_vm8, %v803_v43, %v772_v53 }
 0x11d   : > { %v713_v12 = vrot.slane %v712_v55, 1  ;;  %v865_v13 = vsel %vm864_vm9, %v863_v48, %v788_v57  ;;  %v773_v16 = vsel %vm741_vm10, %v1674_v47, 32  ;;  %v585_v21 = vmul.f32 2.0, %v529_v10 }
 0x11e   : > { %v1682_v62 = vmin.f32 %v676_v44, %v677_v54  ;;  %vm806_vm0 = vcmp.lt.s32.totalorder %v805_v11, %v773_v16  ;;  %v1707_v24 = vmul.f32 0.0625, %v621_v7  ;;  %v608_v28 = vsub.f32 %v1576_v50, %v570_v6  ;;  %v1268_v44 = vpop.f32.mrf.mxu0 }
 0x11f   : > { %v1710_v27 = vmin.f32 %v712_v55, %v713_v12  ;;  %v1714_v30 = vmul.f32 0.0625, %v607_v15  ;;  %v623_v17 = vsub.f32 %v1576_v50, %v585_v21  ;;  %v679_v32 = vmin.f32 %v1684_v3, %v1677_v56 }
 0x120   : > { %vm742_vm12 = vcmp.le.f32.partialorder %v1616_v41, %v1682_v62  ;;  %vm743_vm13 = vcmp.le.f32.partialorder %v1620_v49, %v1682_v62  ;;  %vm744_vm14 = vcmp.le.f32.partialorder %v1630_v59, %v1682_v62  ;;  %vm745_vm15 = vcmp.le.f32.partialorder %v1636_v1, %v1682_v62  ;;  %v459_v6 = vpop.f32.mrf.mxu0 }
 0x121   : > { %v774_v29 = vsel %vm742_vm12, %v1634_v0, 32  ;;  %v775_v20 = vsel %vm743_vm13, %v1644_v14, 32  ;;  %v789_v49 = vsel %vm757_vm11, %v1674_v47, 32  ;;  %v776_v25 = vsel %vm744_vm14, %v1664_v34, 32 }
 0x122   : > { %vm817_vm1 = vcmp.lt.s32.totalorder %v774_v29, %v775_v20  ;;  %vm866_vm2 = vcmp.lt.s32.totalorder %v865_v13, %v789_v49  ;;  %v777_v1 = vsel %vm745_vm15, %v1674_v47, 32  ;;  %vm758_vm4 = vcmp.le.f32.partialorder %v1618_v42, %v1710_v27 }
 0x123   : > { %v818_v26 = vsel %vm817_vm1, %v774_v29, %v775_v20  ;;  %vm759_vm5 = vcmp.le.f32.partialorder %v1614_v39, %v1710_v27  ;;  %v624_v8 = vsub.f32 %v1576_v50, %v586_v9  ;;  %v807_v33 = vsel %vm806_vm0, %v805_v11, %v773_v16 }
 0x124   : > { %vm819_vm3 = vcmp.lt.s32.totalorder %v818_v26, %v776_v25  ;;  %vm760_vm7 = vcmp.le.f32.partialorder %v1632_v63, %v1710_v27  ;;  %v790_v35 = vsel %vm758_vm4, %v1634_v0, 32  ;;  %v791_v36 = vsel %vm759_vm5, %v1644_v14, 32 }
 0x125   : > { %v820_v31 = vsel %vm819_vm3, %v818_v26, %v776_v25  ;;  %v867_v37 = vsel %vm866_vm2, %v865_v13, %v789_v49  ;;  %v715_v38 = vmin.f32 %v1707_v24, %v1680_v58  ;;  %vm877_vm8 = vcmp.lt.s32.totalorder %v790_v35, %v791_v36  ;;  %v539_v25 = vpop.f32.mrf.mxu1  ;;  %v1271_v26 = vpop.f32.mrf.mxu0 }
 0x126   : > { %vm821_vm6 = vcmp.lt.s32.totalorder %v820_v31, %v777_v1  ;;  %v1732_v61 = vmul.f32 0.0625, %v608_v28  ;;  %v680_v40 = vmin.f32 %v679_v32, %v1714_v30  ;;  %v1735_v43 = vmul.f32 0.0625, %v623_v17 }
 0x127   : > { %v822_v39 = vsel %vm821_vm6, %v820_v31, %v777_v1  ;;  %v808_v45 = vrot.slane %v807_v33, 4  ;;  %v792_v46 = vsel %vm760_vm7, %v1664_v34, 32  ;;  %v878_v48 = vsel %vm877_vm8, %v790_v35, %v791_v36 }
 0x128   : > { %v1738_v51 = vmul.f32 0.0625, %v624_v8  ;;  %v868_v52 = vrot.slane %v867_v37, 4  ;;  %v823_v53 = vrot.slane %v822_v39, 4  ;;  %vm879_vm9 = vcmp.lt.s32.totalorder %v878_v48, %v792_v46 }
 0x129   : > { %v681_v54 = vmin.f32 %v680_v40, %v1732_v61  ;;  %vm761_vm10 = vcmp.le.f32.partialorder %v1638_v2, %v1710_v27  ;;  %v716_v55 = vmin.f32 %v715_v38, %v1735_v43  ;;  %vm1744_vm11 = vcmp.lt.s32.totalorder %v807_v33, %v808_v45 }
 0x12a   : > { %v880_v9 = vsel %vm879_vm9, %v878_v48, %v792_v46  ;;  %vm869_vm12 = vcmp.lt.s32.totalorder %v867_v37, %v868_v52  ;;  %vm1749_vm13 = vcmp.lt.s32.totalorder %v822_v39, %v823_v53  ;;  %v793_v12 = vsel %vm761_vm10, %v1674_v47, 32  ;;  %v1295_v48 = vpop.f32.mrf.mxu1 }
 0x12b   : > { %v682_v57 = vrot.slane %v681_v54, 4  ;;  %v717_v10 = vmin.f32 %v716_v55, %v1738_v51  ;;  %v572_v29 = vmul.f32 2.0, %v1268_v44  ;;  %v588_v15 = vmul.f32 2.0, %v1292_v60 }
 0x12c   : > { %v571_v16 = vmul.f32 2.0, %v459_v6  ;;  %v946_v20 = vmin.f32 %v1584_v4, %v1600_v22  ;;  %v950_v21 = vmin.f32 %v1586_v5, %v1602_v23  ;;  %vm881_vm14 = vcmp.lt.s32.totalorder %v880_v9, %v793_v12 }
 0x12d   : > { %v683_v2 = vmin.f32 %v681_v54, %v682_v57  ;;  %v718_v13 = vrot.slane %v717_v10, 4  ;;  %v1760_v1 = vsel %vm1744_vm11, %v807_v33, %v808_v45  ;;  %v1762_v28 = vsel %vm869_vm12, %v867_v37, %v868_v52  ;;  %v469_v52 = vpop.f32.mrf.mxu0 }
 0x12e   : > { %v587_v17 = vmul.f32 2.0, %v539_v25  ;;  %v1766_v32 = vsel %vm1749_vm13, %v822_v39, %v823_v53  ;;  %v947_v8 = vmin.f32 %v1616_v41, %v1630_v59  ;;  %v609_v36 = vsub.f32 %v1576_v50, %v571_v16 }
 0x12f   : > { %v684_v49 = vrot.slane %v683_v2, 2  ;;  %v719_v31 = vmin.f32 %v717_v10, %v718_v13  ;;  %v1771_v38 = vsel %vm881_vm14, %v880_v9, %v793_v12  ;;  %v610_v33 = vsub.f32 %v1576_v50, %v572_v29  ;;  %v549_v29 = vpop.f32.mrf.mxu1 }
 0x130   : > { %v626_v37 = vsub.f32 %v1576_v50, %v588_v15  ;;  %v811_v44 = vrot.slane %v1760_v1, 2  ;;  %v871_v45 = vrot.slane %v1762_v28, 2  ;;  %v574_v39 = vmul.f32 2.0, %v1271_v26 }
 0x131   : > { %v685_v35 = vmin.f32 %v683_v2, %v684_v49  ;;  %v720_v40 = vrot.slane %v719_v31, 2  ;;  %v948_v53 = vmin.f32 %v1684_v3, %v1714_v30  ;;  %v1779_v55 = vmul.f32 0.0625, %v609_v36 }
 0x132   : > { %v625_v57 = vsub.f32 %v1576_v50, %v587_v17  ;;  %v826_v60 = vrot.slane %v1766_v32, 2  ;;  %v883_v6 = vrot.slane %v1771_v38, 4  ;;  %v590_v9 = vmul.f32 2.0, %v1295_v48 }
 0x133   : > { %v686_v46 = vrot.slane %v685_v35, 1  ;;  %v721_v54 = vmin.f32 %v719_v31, %v720_v40  ;;  %v1786_v11 = vmul.f32 0.0625, %v610_v33  ;;  %v1788_v12 = vmul.f32 0.0625, %v626_v37 }
 0x134   : > { %v573_v2 = vmul.f32 2.0, %v469_v52  ;;  %v612_v13 = vsub.f32 %v1576_v50, %v574_v39  ;;  %vm1800_vm2 = vcmp.lt.s32.totalorder %v1760_v1, %v811_v44  ;;  %v1808_v25 = vmul.f32 0.0625, %v625_v57 }
 0x135   : > { %v1784_v7 = vmin.f32 %v685_v35, %v686_v46  ;;  %v722_v10 = vrot.slane %v721_v54, 1  ;;  %v628_v31 = vsub.f32 %v1576_v50, %v590_v9  ;;  %v589_v40 = vmul.f32 2.0, %v549_v29 }
 0x136   : > { %v611_v36 = vsub.f32 %v1576_v50, %v573_v2  ;;  %vm964_vm12 = vcmask 1041409   ;;  %v724_v9 = vmin.f32 %v1808_v25, %v1788_v12  ;;  %vm2059_vm14 = vcmask 1042434  }
 0x137   : > { %vm746_vm15 = vcmp.le.f32.partialorder %v1684_v3, %v1784_v7  ;;  %vm747_vm0 = vcmp.le.f32.partialorder %v1677_v56, %v1784_v7  ;;  %vm748_vm1 = vcmp.le.f32.partialorder %v1714_v30, %v1784_v7  ;;  %v688_v56 = vmin.f32 %v1779_v55, %v1786_v11 }
 0x138   : > { %v778_v16 = vsel %vm746_vm15, %v1634_v0, 32  ;;  %v779_v49 = vsel %vm747_vm0, %v1644_v14, 32  ;;  %vm749_vm3 = vcmp.le.f32.partialorder %v1732_v61, %v1784_v7  ;;  %v1812_v26 = vmin.f32 %v721_v54, %v722_v10 }
 0x139   : > { %vm832_vm4 = vcmp.lt.s32.totalorder %v778_v16, %v779_v49  ;;  %v780_v17 = vsel %vm748_vm1, %v1664_v34, 32  ;;  %v781_v61 = vsel %vm749_vm3, %v1674_v47, 32  ;;  %v1829_v52 = vmul.f32 0.0625, %v611_v36 }
 0x13a   : > { %v833_v35 = vsel %vm832_vm4, %v778_v16, %v779_v49  ;;  %vm762_vm6 = vcmp.le.f32.partialorder %v1707_v24, %v1812_v26  ;;  %vm763_vm7 = vcmp.le.f32.partialorder %v1680_v58, %v1812_v26  ;;  %vm764_vm8 = vcmp.le.f32.partialorder %v1735_v43, %v1812_v26 }
 0x13b   : > { %vm834_vm5 = vcmp.lt.s32.totalorder %v833_v35, %v780_v17  ;;  %v794_v37 = vsel %vm762_vm6, %v1634_v0, 32  ;;  %v795_v46 = vsel %vm763_vm7, %v1644_v14, 32  ;;  %vm765_vm10 = vcmp.le.f32.partialorder %v1738_v51, %v1812_v26 }
 0x13c   : > { %v835_v33 = vsel %vm834_vm5, %v833_v35, %v780_v17  ;;  %v796_v39 = vsel %vm764_vm8, %v1664_v34, 32  ;;  %vm892_vm11 = vcmp.lt.s32.totalorder %v794_v37, %v795_v46  ;;  %v627_v54 = vsub.f32 %v1576_v50, %v589_v40 }
 0x13d   : > { %vm836_vm9 = vcmp.lt.s32.totalorder %v835_v33, %v781_v61  ;;  %v893_v58 = vsel %vm892_vm11, %v794_v37, %v795_v46  ;;  %v1834_v10 = vmul.f32 0.0625, %v612_v13  ;;  %v797_v51 = vsel %vm765_vm10, %v1674_v47, 32 }
 0x13e   : > { %v837_v48 = vsel %vm836_vm9, %v835_v33, %v781_v61  ;;  %vm894_vm13 = vcmp.lt.s32.totalorder %v893_v58, %v796_v39  ;;  %v689_v29 = vmin.f32 %v688_v56, %v1829_v52  ;;  %v1838_v16 = vmul.f32 0.0625, %v627_v54 }
 0x13f   : > { %v838_v57 = vrot.slane %v837_v48, 4  ;;  %v895_v2 = vsel %vm894_vm13, %v893_v58, %v796_v39  ;;  %vm827_vm15 = vcmp.lt.s32.totalorder %v1766_v32, %v826_v60  ;;  %v1843_v50 = vmul.f32 0.0625, %v628_v31 }
 0x140   : > { %vm896_vm1 = vcmp.lt.s32.totalorder %v895_v2, %v797_v51  ;;  %vm968_vm3 = vcmask 1043459   ;;  %vm884_vm4 = vcmp.lt.s32.totalorder %v1771_v38, %v883_v6  ;;  %v690_v17 = vmin.f32 %v689_v29, %v1834_v10 }
 0x141   : > { %vm839_vm0 = vcmp.lt.s32.totalorder %v837_v48, %v838_v57  ;;  %v897_v49 = vsel %vm896_vm1, %v895_v2, %v797_v51  ;;  %v813_v56 = vsel %vm1800_vm2, %v1760_v1, %v811_v44  ;;  %v725_v31 = vmin.f32 %v724_v9, %v1838_v16 }
 0x142   : > { %v840_v13 = vsel %vm839_vm0, %v837_v48, %v838_v57  ;;  %v898_v36 = vrot.slane %v897_v49, 4  ;;  %v828_v40 = vsel %vm827_vm15, %v1766_v32, %v826_v60  ;;  %v951_v61 = vmin.f32 %v1618_v42, %v1632_v63  ;;  %v1910_v48 = vld [vmem:[%s267_s26] sm:$0xff] }
 0x143   : > { %v841_v35 = vrot.slane %v840_v13, 2  ;;  %v691_v33 = vrot.slane %v690_v17, 4  ;;  %v949_v37 = vmin.f32 %v1779_v55, %v1829_v52  ;;  %vm2060_vm5 = vcmask 1044484  }
 0x144   : > { %v993_v1 = vrot.slane %v950_v21, 4  ;;  %v987_v44 = vrot.slane %v947_v8, 7  ;;  %v885_v32 = vsel %vm884_vm4, %v1771_v38, %v883_v6  ;;  %v726_v60 = vmin.f32 %v725_v31, %v1843_v50 }
 0x145   : > { %v814_v42 = vrot.slane %v813_v56, 1  ;;  %vm872_vm2 = vcmp.lt.s32.totalorder %v1762_v28, %v871_v45  ;;  %v989_v5 = vrot.slane %v948_v53, 6  ;;  %v692_v23 = vmin.f32 %v690_v17, %v691_v33 }
 0x146   : > { %v829_v41 = vrot.slane %v828_v40, 1  ;;  %vm842_vm6 = vcmp.lt.s32.totalorder %v840_v13, %v841_v35  ;;  %vm899_vm7 = vcmp.lt.s32.totalorder %v897_v49, %v898_v36  ;;  %v727_v59 = vrot.slane %v726_v60, 4 }
 0x147   : > { %v886_v63 = vrot.slane %v885_v32, 2  ;;  %v995_v21 = vrot.slane %v951_v61, 3  ;;  %v693_v8 = vrot.slane %v692_v23, 2  ;;  %v991_v38 = vrot.slane %v949_v37, 5 }
 0x148   : > { %vm972_vm8 = vcmask 1045509   ;;  %v1882_v6 = vsel %vm872_vm2, %v1762_v28, %v871_v45  ;;  %v965_v3 = vsel %vm964_vm12, %v1682_v62, %v1647_v18  ;;  %v988_v30 = vsel %vm964_vm12, %v987_v44, %v946_v20 }
 0x149   : > { %v728_v53 = vmin.f32 %v726_v60, %v727_v59  ;;  %v1896_v15 = vsel %vm842_vm6, %v840_v13, %v841_v35  ;;  %v1898_v46 = vsel %vm899_vm7, %v897_v49, %v898_v36  ;;  %v952_v28 = vmin.f32 %v1707_v24, %v1735_v43 }
 0x14a   : > { %v694_v45 = vmin.f32 %v692_v23, %v693_v8  ;;  %vm815_vm9 = vcmp.lt.s32.totalorder %v813_v56, %v814_v42  ;;  %vm830_vm10 = vcmp.lt.s32.totalorder %v828_v40, %v829_v41  ;;  %v990_v4 = vsel %vm2059_vm14, %v989_v5, %v988_v30 }
 0x14b   : > { %v729_v22 = vrot.slane %v728_v53, 2  ;;  %vm974_vm11 = vcmask 1046534   ;;  %vm1903_vm13 = vcmp.lt.s32.totalorder %v885_v32, %v886_v63  ;;  %v992_v20 = vsel %vm968_vm3, %v991_v38, %v990_v4 }
 0x14c   : > { %v695_v62 = vrot.slane %v694_v45, 1  ;;  %v953_v39 = vmin.f32 %v1808_v25, %v1838_v16  ;;  %v874_v24 = vrot.slane %v1882_v6, 1  ;;  %v844_v43 = vrot.slane %v1896_v15, 1 }
 0x14d   : > { %v901_v58 = vrot.slane %v1898_v46, 2  ;;  %v730_v54 = vmin.f32 %v728_v53, %v729_v22  ;;  %v1915_v57 = vsel %vm815_vm9, %v813_v56, %v814_v42  ;;  %v1917_v9 = vsel %vm830_vm10, %v828_v40, %v829_v41 }
 0x14e   : > { %v997_v51 = vrot.slane %v952_v28, 2  ;;  %v696_v2 = vmin.f32 %v694_v45, %v695_v62  ;;  %vm976_vm15 = vcmask 1047559   ;;  %v967_v29 = vsel %vm2059_vm14, %v1784_v7, %v965_v3 }
 0x14f   : > { %v994_v13 = vsel %vm2060_vm5, %v993_v1, %v992_v20  ;;  %v731_v49 = vrot.slane %v730_v54, 1  ;;  %v1924_v17 = vsel %vm1903_vm13, %v885_v32, %v886_v63  ;;  %vm955_vm0 = vcmp.gt.s32.totalorder %v1910_v48, 0 }
 0x150   : > { %vm750_vm1 = vcmp.le.f32.partialorder %v1779_v55, %v696_v2  ;;  %vm751_vm4 = vcmp.le.f32.partialorder %v1786_v11, %v696_v2  ;;  %vm752_vm2 = vcmp.le.f32.partialorder %v1829_v52, %v696_v2  ;;  %v999_v56 = vrot.slane %v953_v39, 1 }
 0x151   : > { %vm1933_vm6 = vcmp.lt.s32.totalorder %v1896_v15, %v844_v43  ;;  %v782_v35 = vsel %vm750_vm1, %v1634_v0, 32  ;;  %v783_v36 = vsel %vm751_vm4, %v1644_v14, 32  ;;  %vm1940_vm7 = vcmp.lt.s32.totalorder %v1898_v46, %v901_v58 }
 0x152   : > { %vm753_vm9 = vcmp.le.f32.partialorder %v1834_v10, %v696_v2  ;;  %vm847_vm10 = vcmp.lt.s32.totalorder %v782_v35, %v783_v36  ;;  %v969_v55 = vsel %vm968_vm3, %v696_v2, %v967_v29  ;;  %v732_v11 = vmin.f32 %v730_v54, %v731_v49 }
 0x153   : > { %v784_v52 = vsel %vm752_vm2, %v1664_v34, 32  ;;  %v848_v40 = vsel %vm847_vm10, %v782_v35, %v783_v36  ;;  %v971_v61 = vsel %vm2060_vm5, %v1649_v19, %v969_v55  ;;  %v996_v33 = vsel %vm972_vm8, %v995_v21, %v994_v13 }
 0x154   : > { %vm849_vm13 = vcmp.lt.s32.totalorder %v848_v40, %v784_v52  ;;  %vm766_vm1 = vcmp.le.f32.partialorder %v1808_v25, %v732_v11  ;;  %vm767_vm4 = vcmp.le.f32.partialorder %v1788_v12, %v732_v11  ;;  %vm768_vm14 = vcmp.le.f32.partialorder %v1838_v16, %v732_v11 }
 0x155   : > { %v785_v10 = vsel %vm753_vm9, %v1674_v47, 32  ;;  %v850_v37 = vsel %vm849_vm13, %v848_v40, %v784_v52  ;;  %v798_v1 = vsel %vm766_vm1, %v1634_v0, 32  ;;  %v799_v44 = vsel %vm767_vm4, %v1644_v14, 32 }
 0x156   : > { %vm851_vm2 = vcmp.lt.s32.totalorder %v850_v37, %v785_v10  ;;  %vm769_vm10 = vcmp.le.f32.partialorder %v1843_v50, %v732_v11  ;;  %vm907_vm5 = vcmp.lt.s32.totalorder %v798_v1, %v799_v44  ;;  %v998_v19 = vsel %vm974_vm11, %v997_v51, %v996_v33 }
 0x157   : > { %v852_v32 = vsel %vm851_vm2, %v850_v37, %v785_v10  ;;  %v800_v25 = vsel %vm768_vm14, %v1664_v34, 32  ;;  %v908_v12 = vsel %vm907_vm5, %v798_v1, %v799_v44  ;;  %v973_v16 = vsel %vm972_vm8, %v1710_v27, %v971_v61 }
 0x158   : > { %v853_v60 = vrot.slane %v852_v32, 4  ;;  %vm909_vm9 = vcmp.lt.s32.totalorder %v908_v12, %v800_v25  ;;  %v903_v0 = vsel %vm1940_vm7, %v1898_v46, %v901_v58  ;;  %v975_v14 = vsel %vm974_vm11, %v1812_v26, %v973_v16 }
 0x159   : > { %v801_v34 = vsel %vm769_vm10, %v1674_v47, 32  ;;  %v910_v50 = vsel %vm909_vm9, %v908_v12, %v800_v25  ;;  %v977_v42 = vsel %vm976_vm15, %v732_v11, %v975_v14  ;;  %v1000_v27 = vsel %vm976_vm15, %v999_v56, %v998_v19 }
 0x15a   : > { %vm854_vm14 = vcmp.lt.s32.totalorder %v852_v32, %v853_v60  ;;  %vm911_vm5 = vcmp.lt.s32.totalorder %v910_v50, %v801_v34  ;;  %v889_v5 = vrot.slane %v1924_v17, 1  ;;  %v1002_v23 = vsel %vm955_vm0, %v977_v42, %v1000_v27 }
 0x15b   : > { %v855_v41 = vsel %vm854_vm14, %v852_v32, %v853_v60  ;;  %v912_v59 = vsel %vm911_vm5, %v910_v50, %v801_v34  ;;  %vm875_vm7 = vcmp.lt.s32.totalorder %v1882_v6, %v874_v24  ;;  %v904_v47 = vrot.slane %v903_v0, 1  ;;  %1003 = vst [vmem:[%s284_s8] sm:$0xff] %v1002_v23 }
 0x15c   : > { %v846_v26 = vsel %vm1933_vm6, %v1896_v15, %v844_v43  ;;  %v856_v63 = vrot.slane %v855_v41, 2  ;;  %v913_v21 = vrot.slane %v912_v59, 4  ;;  %v930_v8 = vsub.s32 31, %v1915_v57 }
 0x15d   : > { %vm922_vm13 = vcmp.gt.s32.totalorder %v1915_v57, 15  ;;  %vm923_vm1 = vcmp.gt.s32.totalorder %v1917_v9, 15  ;;  %v931_v38 = vsub.s32 31, %v1917_v9  ;;  %v876_v3 = vsel %vm875_vm7, %v1882_v6, %v874_v24 }
 0x15e   : > { %vm857_vm4 = vcmp.lt.s32.totalorder %v855_v41, %v856_v63  ;;  %vm914_vm2 = vcmp.lt.s32.totalorder %v912_v59, %v913_v21  ;;  %vm890_vm10 = vcmp.lt.s32.totalorder %v1924_v17, %v889_v5  ;;  %v932_v30 = vsub.s32 31, %v846_v26 }
 0x15f   : > { %v858_v53 = vsel %vm857_vm4, %v855_v41, %v856_v63  ;;  %vm905_vm6 = vcmp.lt.s32.totalorder %v903_v0, %v904_v47  ;;  %v915_v15 = vsel %vm914_vm2, %v912_v59, %v913_v21  ;;  %vm924_vm9 = vcmp.gt.s32.totalorder %v846_v26, 15 }
 0x160   : > { %v859_v46 = vrot.slane %v858_v53, 1  ;;  %v916_v28 = vrot.slane %v915_v15, 2  ;;  %v938_v45 = vsel %vm922_vm13, %v930_v8, %v1915_v57  ;;  %v939_v4 = vsel %vm923_vm1, %v931_v38, %v1917_v9 }
 0x161   : > { %v891_v22 = vsel %vm890_vm10, %v1924_v17, %v889_v5  ;;  %v906_v6 = vsel %vm905_vm6, %v903_v0, %v904_v47  ;;  %vm926_vm7 = vcmp.gt.s32.totalorder %v876_v3, 15  ;;  %v934_v20 = vsub.s32 31, %v876_v3 }
 0x162   : > { %vm860_vm14 = vcmp.lt.s32.totalorder %v858_v53, %v859_v46  ;;  %vm917_vm5 = vcmp.lt.s32.totalorder %v915_v15, %v916_v28  ;;  %v940_v39 = vsel %vm924_vm9, %v932_v30, %v846_v26  ;;  %v935_v58 = vsub.s32 31, %v891_v22 }
 0x163   : > { %v861_v18 = vsel %vm860_vm14, %v858_v53, %v859_v46  ;;  %v918_v62 = vsel %vm917_vm5, %v915_v15, %v916_v28  ;;  %v1004_v54 = vsel %vm964_vm12, %v939_v4, %v938_v45  ;;  %vm927_vm13 = vcmp.gt.s32.totalorder %v891_v22, 15 }
 0x164   : > { %v919_v24 = vrot.slane %v918_v62, 1  ;;  %vm925_vm4 = vcmp.gt.s32.totalorder %v861_v18, 15  ;;  %v933_v43 = vsub.s32 31, %v861_v18  ;;  %v936_v57 = vsub.s32 31, %v906_v6 }
 0x165   : > { %vm928_vm2 = vcmp.gt.s32.totalorder %v906_v6, 15  ;;  %vm2075_vm10 = vcmask 1042434   ;;  %v942_v29 = vsel %vm926_vm7, %v934_v20, %v876_v3  ;;  %v943_v17 = vsel %vm927_vm13, %v935_v58, %v891_v22 }
 0x166   : > { %vm920_vm1 = vcmp.lt.s32.totalorder %v918_v62, %v919_v24  ;;  %v941_v9 = vsel %vm925_vm4, %v933_v43, %v861_v18  ;;  %v1005_v51 = vsel %vm2075_vm10, %v940_v39, %v1004_v54  ;;  %vm2076_vm9 = vcmask 1044484  }
 0x167   : > { %v921_v2 = vsel %vm920_vm1, %v918_v62, %v919_v24  ;;  %v1006_v13 = vsel %vm968_vm3, %v941_v9, %v1005_v51  ;;  %v944_v7 = vsel %vm928_vm2, %v936_v57, %v906_v6 }
 0x168   : > { %vm929_vm6 = vcmp.gt.s32.totalorder %v921_v2, 15  ;;  %v937_v49 = vsub.s32 31, %v921_v2  ;;  %v1007_v56 = vsel %vm2076_vm9, %v942_v29, %v1006_v13 }
 0x169   : > { %v1008_v35 = vsel %vm972_vm8, %v943_v17, %v1007_v56 }
 0x16a   : > { %v945_v36 = vsel %vm929_vm6, %v937_v49, %v921_v2  ;;  %v1009_v31 = vsel %vm974_vm11, %v944_v7, %v1008_v35 }
 0x16b   : > { %v1010_v55 = vsel %vm976_vm15, %v945_v36, %v1009_v31 }
 0x16c   : > { %v1011_v11 = vsel %vm955_vm0, %v1010_v55, 0 }
 0x16d   : > { %1012 = vst [vmem:[%s263_s11] sm:$0xff] %v1011_v11 }
 0x16e   : > { %1380 = shalt.err (!%p1377_p3)
}
 0x16f   : > { %s1381_s26 = scalar_lea.hbm %s2014_s15, 128  ;;  %s1385_s8 = scalar_lea.hbm %s2058_s5, 256 }
 0x170   : > { %p1382_p4 = scmp.ne.s32.totalorder %s2014_s15, %s1381_s26  ;;  %p1386_p9 = scmp.lt.s32.totalorder %s2014_s15, %s2058_s5 }
 0x171   : > { %p1387_p10 = scmp.lt.s32.totalorder %s1385_s8, %s1381_s26 }
 0x172   : > { %p1383_p7 = pnand %p1382_p4, %p1498_p5 }
 0x173   : > { %p1388_p11 = por %p1387_p10, %p1386_p9 }
 0x174   : > { %p1384_p8 = pneg %p1383_p7 }
 0x176   : > { %p1389_p12 = pnand %p1388_p11, %p1384_p8 }
 0x178   : > { %1392 = shalt.err (!%p1389_p12)
}
 0x179   : > { %1328 = dma.vmem_to_hbm [thread:$0]  (%p1498_p5), %s1035_s12, 128, %s2014_s15, %s1018_s22  }
 0x17a PF: > { %p1334_p13 = scmp.ge.s32.totalorder %s1427_s21, 2  ;;  %s1053_s10 = sand.u32 1, %s1415_s18  }
 0x17b   : > { %s1054_s11 = scalar_lea.sflag [#allocation3], %s1053_s10 }
 0x17c   : > { %p1331_p0 = pnand %p1334_p13, %p1502_p6 }
 0x17e   : > { %p1332_p1 = pneg %p1331_p0 }
 0x180   : > { %1410 = dma.done.wait (%p1332_p1), %s1054_s11, 128  }
 0x181   : > { %1412 = vsyncadd (%p1332_p1), %s1054_s11, 4294967168  ;;  %p16_p2 = scmp.ge.s32.totalorder %s1485_s24, 4   ;;  %s2077_s18 = smov %s1419_s19 }
 0x182   : > { %s2078_s19 = smov %s1423_s20  ;;  %s2079_s20 = smov %s1496_s27 }
 0x183   : > { %s2080_s21 = smov %s1485_s24  ;;  %18 = sbr.rel (!%p16_p2) target bundleno = 3 (0x3), region = 92 }
 0x188   :  { %1059 = vsyncpa [#allocation3], 1 }
 0x189   :  { %1061 = vsyncpa [#allocation3 + $0x1], 1 }

</bundles_post_ra>
